<compile_context>
chip_gen: v5e
topology: v5e:2x2
jax: 0.10.0
libtpu: 0.0.40
codegen_flags: <defaults>
</compile_context>

<pallas_src>
import functools

import jax
import jax.numpy as jnp
from jax.experimental import pallas as pl
from jax.experimental.pallas import tpu as pltpu

# Target elements per input block (~512 KiB in f32) -> double-buffered inputs
# + accumulators stay ~3 MiB of VMEM, safe on v5e/v6e/v7x defaults.
_TARGET_BLOCK_ELEMS = 128 * 1024
_SUBLANE = 8


def _pick_tile_h(H, W):
    """Choose the H-tile: big enough to amortize per-step overhead, and either a
    multiple of 8 (sublane constraint) or the full H extent."""
    th = max(1, _TARGET_BLOCK_ELEMS // max(W, 1))
    if th >= H:
        return H
    th = (th // _SUBLANE) * _SUBLANE
    if th < _SUBLANE:
        # W is enormous; fall back to whole-H blocks (still legal: block == dim).
        return H
    return th


def _mse_reduce_kernel(pred_ref, gt_ref, sumsq_ref, count_ref,
                       acc_sq, acc_cnt, *, valid_h, tile_h):
    h_i = pl.program_id(1)

    @pl.when(h_i == 0)
    def _():
        acc_sq[...] = jnp.zeros_like(acc_sq)
        acc_cnt[...] = jnp.zeros_like(acc_cnt)

    # Blocks are (1, 1, tile_h, W); widen to f32 on the loaded tile so bf16
    # inputs are supported (and v5e has no bf16 VPU anyway).
    p = pred_ref[0, 0].astype(jnp.float32)   # channel 0 of prediction
    g = gt_ref[0, 0].astype(jnp.float32)

    if valid_h % tile_h == 0:
        mask = g > 0.0
    else:
        # Ragged last H-tile: rows past H hold unspecified pad values -> mask.
        row_ids = jax.lax.broadcasted_iota(jnp.int32, p.shape, 0) + h_i * tile_h
        mask = (row_ids < valid_h) & (g > 0.0)

    err = p - g
    # Pure VPU element-wise accumulation; no per-step XLU reductions.
    acc_sq[...] = acc_sq[...] + jnp.where(mask, err * err, 0.0)
    acc_cnt[...] = acc_cnt[...] + mask.astype(jnp.float32)

    # Single cross-lane/sublane reduction in the epilogue only.
    @pl.when(h_i == pl.num_programs(1) - 1)
    def _():
        s = jnp.sum(acc_sq[...])
        c = jnp.sum(acc_cnt[...])
        sumsq_ref[...] = jnp.broadcast_to(s, sumsq_ref.shape)
        count_ref[...] = jnp.broadcast_to(c, count_ref.shape)


def mse_loss_pallas(prediction, gt):
    """prediction: (N, C, H, W); gt: (N, 1, H, W). Returns scalar f32 loss."""
    N, C, H, W = prediction.shape
    assert gt.shape == (N, 1, H, W), "gt must be (N, 1, H, W)"

    tile_h = _pick_tile_h(H, W)
    n_h = pl.cdiv(H, tile_h)

    kernel = functools.partial(_mse_reduce_kernel, valid_h=H, tile_h=tile_h)

    # Per-batch partial sums, written as lane-dense (1, 8, 128) blocks
    # (broadcasted scalar); reduced to totals in the wrapper.
    sumsq, count = pl.pallas_call(
        kernel,
        out_shape=(
            jax.ShapeDtypeStruct((N, _SUBLANE, 128), jnp.float32),
            jax.ShapeDtypeStruct((N, _SUBLANE, 128), jnp.float32),
        ),
        grid_spec=pltpu.PrefetchScalarGridSpec(
            num_scalar_prefetch=0,
            grid=(N, n_h),
            in_specs=[
                # Select channel 0 of prediction directly in the index_map:
                # only channel 0 is DMA'd from HBM.
                pl.BlockSpec((1, 1, tile_h, W), lambda n, h: (n, 0, h, 0)),
                pl.BlockSpec((1, 1, tile_h, W), lambda n, h: (n, 0, h, 0)),
            ],
            out_specs=(
                pl.BlockSpec((1, _SUBLANE, 128), lambda n, h: (n, 0, 0)),
                pl.BlockSpec((1, _SUBLANE, 128), lambda n, h: (n, 0, 0)),
            ),
            scratch_shapes=[
                pltpu.VMEM((tile_h, W), jnp.float32),
                pltpu.VMEM((tile_h, W), jnp.float32),
            ],
        ),
        compiler_params=pltpu.CompilerParams(
            # Batch axis parallel (v7x 2-TC split), reduction axis arbitrary.
            dimension_semantics=("parallel", "arbitrary"),
        ),
    )(prediction, gt)

    total_sq = jnp.sum(sumsq[:, 0, 0])
    total_cnt = jnp.sum(count[:, 0, 0])
    # Matches torch.mean(err[mask]**2); NaN if no gt element is > 0, like torch.
    return total_sq / total_cnt


def mse_loss_ref(prediction, gt):
    err = prediction[:, 0:1].astype(jnp.float32) - gt.astype(jnp.float32)
    mask = gt > 0
    sq = jnp.where(mask, err * err, 0.0)
    return jnp.sum(sq) / jnp.sum(mask.astype(jnp.float32))


if __name__ == "__main__":
    key = jax.random.PRNGKey(0)
    k1, k2 = jax.random.split(key)

    N, C, H, W = 2, 4, 16, 16
    prediction = jax.random.normal(k1, (N, C, H, W), dtype=jnp.float32)
    # gt with a mix of positive (valid) and non-positive (invalid) depth values
    gt = jax.random.uniform(k2, (N, 1, H, W), dtype=jnp.float32,
                            minval=-1.0, maxval=2.0)

    loss = mse_loss_pallas(prediction, gt)
    jax.block_until_ready(loss)

    ref = mse_loss_ref(prediction, gt)
    assert jnp.allclose(loss, ref, rtol=1e-5, atol=1e-6), (loss, ref)

    print("KERNEL_OK")
</pallas_src>

<mosaic_0001>
module attributes {stable_mosaic.version = 11 : i64} {
  func.func @_mse_reduce_kernel(%arg0: i32, %arg1: i32, %arg2: memref<1x1x16x16xf32, #tpu.memory_space<vmem>>, %arg3: memref<1x1x16x16xf32, #tpu.memory_space<vmem>>, %arg4: memref<1x8x128xf32, #tpu.memory_space<vmem>>, %arg5: memref<1x8x128xf32, #tpu.memory_space<vmem>>, %arg6: memref<16x16xf32, #tpu.memory_space<vmem>>, %arg7: memref<16x16xf32, #tpu.memory_space<vmem>>) attributes {dimension_semantics = [#tpu.dimension_semantics<parallel>, #tpu.dimension_semantics<arbitrary>], iteration_bounds = array<i64: 2, 1>, scalar_prefetch = 0 : i64, scratch_operands = 2 : i64, tpu.core_type = #tpu.core_type<tc>, window_params = [{transform_indices = @transform_0, window_bounds = array<i64: 1, 1, 16, 16>}, {transform_indices = @transform_1, window_bounds = array<i64: 1, 1, 16, 16>}, {transform_indices = @transform_2, window_bounds = array<i64: 1, 8, 128>}, {transform_indices = @transform_3, window_bounds = array<i64: 1, 8, 128>}]} {
    %c0_i32 = arith.constant 0 : i32
    %0 = arith.cmpi eq, %arg1, %c0_i32 : i32
    %1 = arith.extui %0 : i1 to i32
    %c0_i32_0 = arith.constant 0 : i32
    %2 = arith.cmpi ne, %1, %c0_i32_0 : i32
    scf.if %2 {
      %cst_19 = arith.constant 0.000000e+00 : f32
      %24 = vector.broadcast %cst_19 : f32 to vector<16x16xf32>
      %c0_20 = arith.constant 0 : index
      %c0_21 = arith.constant 0 : index
      %25 = vector.load %arg6[%c0_20, %c0_21] : memref<16x16xf32, #tpu.memory_space<vmem>>, vector<16x16xf32>
      tpu.vector_store %arg6[%c0_20, %c0_21], %24 {strides = array<i32>} : memref<16x16xf32, #tpu.memory_space<vmem>>, vector<16x16xf32>,
      %cst_22 = arith.constant 0.000000e+00 : f32
      %26 = vector.broadcast %cst_22 : f32 to vector<16x16xf32>
      %c0_23 = arith.constant 0 : index
      %c0_24 = arith.constant 0 : index
      %27 = vector.load %arg7[%c0_23, %c0_24] : memref<16x16xf32, #tpu.memory_space<vmem>>, vector<16x16xf32>
      tpu.vector_store %arg7[%c0_23, %c0_24], %26 {strides = array<i32>} : memref<16x16xf32, #tpu.memory_space<vmem>>, vector<16x16xf32>,
    } else {
    }
    %c0 = arith.constant 0 : index
    %c0_1 = arith.constant 0 : index
    %c0_2 = arith.constant 0 : index
    %c0_3 = arith.constant 0 : index
    %3 = vector.load %arg2[%c0, %c0_1, %c0_2, %c0_3] : memref<1x1x16x16xf32, #tpu.memory_space<vmem>>, vector<1x1x16x16xf32>
    %4 = vector.shape_cast %3 : vector<1x1x16x16xf32> to vector<16x16xf32>
    %c0_4 = arith.constant 0 : index
    %c0_5 = arith.constant 0 : index
    %c0_6 = arith.constant 0 : index
    %c0_7 = arith.constant 0 : index
    %5 = vector.load %arg3[%c0_4, %c0_5, %c0_6, %c0_7] : memref<1x1x16x16xf32, #tpu.memory_space<vmem>>, vector<1x1x16x16xf32>
    %6 = vector.shape_cast %5 : vector<1x1x16x16xf32> to vector<16x16xf32>
    %cst = arith.constant 0.000000e+00 : f32
    %7 = vector.broadcast %cst : f32 to vector<16x16xf32>
    %8 = arith.cmpf ogt, %6, %7 : vector<16x16xf32>
    %9 = arith.subf %4, %6 : vector<16x16xf32>
    %c0_8 = arith.constant 0 : index
    %c0_9 = arith.constant 0 : index
    %10 = vector.load %arg6[%c0_8, %c0_9] : memref<16x16xf32, #tpu.memory_space<vmem>>, vector<16x16xf32>
    %11 = arith.mulf %9, %9 : vector<16x16xf32>
    %cst_10 = arith.constant 0.000000e+00 : f32
    %12 = vector.broadcast %cst_10 : f32 to vector<16x16xf32>
    %13 = arith.select %8, %11, %12 : vector<16x16xi1>, vector<16x16xf32>
    %14 = arith.addf %10, %13 : vector<16x16xf32>
    %c0_11 = arith.constant 0 : index
    %c0_12 = arith.constant 0 : index
    %15 = vector.load %arg6[%c0_11, %c0_12] : memref<16x16xf32, #tpu.memory_space<vmem>>, vector<16x16xf32>
    tpu.vector_store %arg6[%c0_11, %c0_12], %14 {strides = array<i32>} : memref<16x16xf32, #tpu.memory_space<vmem>>, vector<16x16xf32>,
    %c0_13 = arith.constant 0 : index
    %c0_14 = arith.constant 0 : index
    %16 = vector.load %arg7[%c0_13, %c0_14] : memref<16x16xf32, #tpu.memory_space<vmem>>, vector<16x16xf32>
    %17 = arith.extui %8 : vector<16x16xi1> to vector<16x16xi32>
    %18 = arith.sitofp %17 : vector<16x16xi32> to vector<16x16xf32>
    %19 = arith.addf %16, %18 : vector<16x16xf32>
    %c0_15 = arith.constant 0 : index
    %c0_16 = arith.constant 0 : index
    %20 = vector.load %arg7[%c0_15, %c0_16] : memref<16x16xf32, #tpu.memory_space<vmem>>, vector<16x16xf32>
    tpu.vector_store %arg7[%c0_15, %c0_16], %19 {strides = array<i32>} : memref<16x16xf32, #tpu.memory_space<vmem>>, vector<16x16xf32>,
    %c0_i32_17 = arith.constant 0 : i32
    %21 = arith.cmpi eq, %arg1, %c0_i32_17 : i32
    %22 = arith.extui %21 : i1 to i32
    %c0_i32_18 = arith.constant 0 : i32
    %23 = arith.cmpi ne, %22, %c0_i32_18 : i32
    scf.if %23 {
      %c0_19 = arith.constant 0 : index
      %c0_20 = arith.constant 0 : index
      %24 = vector.load %arg6[%c0_19, %c0_20] : memref<16x16xf32, #tpu.memory_space<vmem>>, vector<16x16xf32>
      %25 = vector.shape_cast %24 : vector<16x16xf32> to vector<1x16x16xf32>
      %cst_21 = arith.constant dense<0.000000e+00> : vector<1xf32>
      %26 = vector.multi_reduction <add>, %25, %cst_21 [1, 2] : vector<1x16x16xf32> to vector<1xf32>
      %27 = vector.shape_cast %26 : vector<1xf32> to vector<1x1x1xf32>
      %28 = vector.extract %27[0, 0, 0] : f32 from vector<1x1x1xf32>
      %c0_22 = arith.constant 0 : index
      %c0_23 = arith.constant 0 : index
      %29 = vector.load %arg7[%c0_22, %c0_23] : memref<16x16xf32, #tpu.memory_space<vmem>>, vector<16x16xf32>
      %30 = vector.shape_cast %29 : vector<16x16xf32> to vector<1x16x16xf32>
      %cst_24 = arith.constant dense<0.000000e+00> : vector<1xf32>
      %31 = vector.multi_reduction <add>, %30, %cst_24 [1, 2] : vector<1x16x16xf32> to vector<1xf32>
      %32 = vector.shape_cast %31 : vector<1xf32> to vector<1x1x1xf32>
      %33 = vector.extract %32[0, 0, 0] : f32 from vector<1x1x1xf32>
      %34 = vector.broadcast %28 : f32 to vector<1x8x128xf32>
      %c0_25 = arith.constant 0 : index
      %c0_26 = arith.constant 0 : index
      %c0_27 = arith.constant 0 : index
      %35 = vector.load %arg4[%c0_25, %c0_26, %c0_27] : memref<1x8x128xf32, #tpu.memory_space<vmem>>, vector<1x8x128xf32>
      tpu.vector_store %arg4[%c0_25, %c0_26, %c0_27], %34 {strides = array<i32>} : memref<1x8x128xf32, #tpu.memory_space<vmem>>, vector<1x8x128xf32>,
      %36 = vector.broadcast %33 : f32 to vector<1x8x128xf32>
      %c0_28 = arith.constant 0 : index
      %c0_29 = arith.constant 0 : index
      %c0_30 = arith.constant 0 : index
      %37 = vector.load %arg5[%c0_28, %c0_29, %c0_30] : memref<1x8x128xf32, #tpu.memory_space<vmem>>, vector<1x8x128xf32>
      tpu.vector_store %arg5[%c0_28, %c0_29, %c0_30], %36 {strides = array<i32>} : memref<1x8x128xf32, #tpu.memory_space<vmem>>, vector<1x8x128xf32>,
    } else {
    }
    return
  }
  func.func @transform_0(%arg0: i32, %arg1: i32) -> (i32, i32, i32, i32) {
    %c0_i32 = arith.constant 0 : i32
    %c0_i32_0 = arith.constant 0 : i32
    %c0_i32_1 = arith.constant 0 : i32
    return %arg0, %c0_i32, %arg1, %c0_i32_0 : i32, i32, i32, i32
  }
  func.func @transform_1(%arg0: i32, %arg1: i32) -> (i32, i32, i32, i32) {
    %c0_i32 = arith.constant 0 : i32
    %c0_i32_0 = arith.constant 0 : i32
    %c0_i32_1 = arith.constant 0 : i32
    return %arg0, %c0_i32, %arg1, %c0_i32_0 : i32, i32, i32, i32
  }
  func.func @transform_2(%arg0: i32, %arg1: i32) -> (i32, i32, i32) {
    %c0_i32 = arith.constant 0 : i32
    %c0_i32_0 = arith.constant 0 : i32
    %c0_i32_1 = arith.constant 0 : i32
    return %arg0, %c0_i32, %c0_i32_0 : i32, i32, i32
  }
  func.func @transform_3(%arg0: i32, %arg1: i32) -> (i32, i32, i32) {
    %c0_i32 = arith.constant 0 : i32
    %c0_i32_0 = arith.constant 0 : i32
    %c0_i32_1 = arith.constant 0 : i32
    return %arg0, %c0_i32, %c0_i32_0 : i32, i32, i32
  }
}

</mosaic_0001>

<bundles_post_ra>
// kernel: tpu_custom_call.1
= control target key start
LH: loop header
LB: loop body
LE: loop exit
PB: predicated region body
PF: predicated region fallthrough
CT: control target
= control target key end

     0   :  { %s990_s0 = inlined_call_operand.hbm [shape: f32[2,4,16,16], index: 0, kind: input, shape index: {}]   ;;  %s991_s1 = inlined_call_operand.hbm [shape: f32[2,1,16,16], index: 1, kind: input, shape index: {}]   ;;  %s992_s2 = inlined_call_operand.hbm [shape: f32[2,8,128], index: 2, kind: output, shape index: {0}]   ;;  %s993_s3 = inlined_call_operand.hbm [shape: f32[2,8,128], index: 3, kind: output, shape index: {1}]  }
   0x1   :  { %994 = sst [smem:[#allocation16_spill]] %s990_s0 }
   0x2   :  { %9 = vsyncpa [#allocation5], 0 }
   0x3   :  { %11 = vsyncpa [#allocation5 + $0x1], 0 }
   0x4   :  { %12 = vsyncpa [#allocation8], 0 }
   0x5   :  { %14 = vsyncpa [#allocation8 + $0x1], 0 }
   0x6   :  { %15 = vsyncpa [#allocation6], 0 }
   0x7   :  { %17 = vsyncpa [#allocation6 + $0x1], 0 }
   0x8   :  { %18 = vsyncpa [#allocation11], 0 }
   0x9   :  { %20 = vsyncpa [#allocation11 + $0x1], 0  ;;  %s821_s12 = smov 0   ;;  %s823_s13 = smov 0  }
   0xa   :  { %s825_s14 = smov 0   ;;  %s827_s15 = smov 0  }
   0xb   :  { %s829_s16 = smov 0   ;;  %s831_s17 = smov 0  }
   0xc LB: > { %s514_s18 = sadd.s32 4294967295, %s796_s17   ;;  %s515_s19 = sadd.s32 4294967294, %s796_s17   ;;  %s796_s17 = sphi %s831_s17, %s26_s17   ;;  %s792_s16 = sphi %s829_s16, %s1005_s16   ;;  %s788_s15 = sphi %s827_s15, %s1004_s15   ;;  %s784_s14 = sphi %s825_s14, %s1003_s14   ;;  %s780_s13 = sphi %s823_s13, %s1002_s13   ;;  %s776_s12 = sphi %s821_s12, %s1001_s12  }
   0xd   : > { %s38_s20 = sadd.s32 1, %s792_s16  ;;  %s47_s21 = sadd.s32 1, %s784_s14 }
   0xe   : > { %p40_p0 = scmp.ge.s32.totalorder %s38_s20, 2  ;;  %p54_p1 = scmp.ne.s32.totalorder %s784_s14, %s780_s13 }
   0xf   : > { %p55_p2 = scmp.eq.s32.totalorder %s796_s17, 0  ;;  %p60_p3 = scmp.ne.s32.totalorder %s780_s13, %s776_s12 }
  0x10   : > { %s1007_s20 = smov (%p40_p0, %s38_s20), 0  ;;  %p61_p5 = scmp.eq.s32.totalorder %s514_s18, 0 }
  0x11   : > { %p862_p4 = por %p55_p2, %p54_p1  ;;  %s42_s23 = ssub.s32 %s792_s16, %s1007_s20 }
  0x12   : > { %p112_p6 = scmp.eq.s32.totalorder %s514_s18, 1  ;;  %p45_p7 = scmp.eq.s32.totalorder %s42_s23, 0 }
  0x13   : > { %p868_p8 = por %p61_p5, %p60_p3  ;;  %p118_p10 = scmp.eq.s32.totalorder %s515_s19, 1 }
  0x14   : > { %p872_p9 = por %p112_p6, %p54_p1  ;;  %p517_p12 = scmp.ge.s32.totalorder %s796_s17, 2 }
  0x15   : > { %s877_s26 = scalar_select %p45_p7, %s784_s14, %s47_s21  }
  0x16   : > { %p879_p11 = por %p118_p10, %p60_p3  ;;  %p565_p13 = scmp.lt.s32.totalorder %s796_s17, 2 }
  0x17   : > { %s886_s28 = sand.u32 1, %s784_s14   ;;  %s537_s30 = sshll.u32 %s792_s16, 6 }
  0x18   : > { %s518_s29 = sshll.u32 %s886_s28, 4  ;;  %s999_s0 = sld [smem:[#allocation16_spill]] }
  0x19   : > { %s168_s7 = scalar_lea.vmem [#allocation4], %s518_s29  ;;  %p895_p0 = pnand %p565_p13, %p862_p4 }
  0x1a   : > { %s178_s8 = sshll.u32 %s168_s7, 4  ;;  %p524_p1 = scmp.ge.s32.totalorder %s796_s17, 1  ;;  %s179_s8 = int_to_ptr.vmem [resolvable:$true] %s178_s8 }
  0x1b   : > { %s165_s11 = scalar_lea.sflag [#allocation5], %s886_s28  ;;  %s798_s18 = smov 128  }
  0x1c   : > { %s799_s19 = smov 8   ;;  %p210_p2 = scmp.lt.s32.totalorder %s796_s17, 3 }
  0x1d   : > { %s538_s21 = sshll.u32 %s792_s16, 4  ;;  %s192_s5 = scalar_lea.vmem [#allocation7], %s518_s29 }
  0x1e   : > { %s175_s6 = scalar_lea.hbm %s999_s0, %s537_s30  ;;  %p211_p3 = pnand %p524_p1, %p210_p2 }
  0x1f   : > { %s176_s9 = sshll.u32 %s175_s6, 4  ;;  %s199_s22 = scalar_lea.hbm %s991_s1, %s538_s21  ;;  %s177_s9 = int_to_ptr.hbm [resolvable:$true] %s176_s9 }
  0x20   : > { %554 = dma.hbm_to_vmem [thread:$0]  (!%p895_p0), %s177_s9, 256, %s179_s8, %s165_s11, %s798_s18, %s798_s18, %s799_s19  }
  0x21   : > { %s200_s4 = sshll.u32 %s199_s22, 4  ;;  %s202_s6 = sshll.u32 %s192_s5, 4  ;;  %s201_s4 = int_to_ptr.hbm [resolvable:$true] %s200_s4  ;;  %s203_s6 = int_to_ptr.vmem [resolvable:$true] %s202_s6 }
  0x22   : > { %s189_s7 = scalar_lea.sflag [#allocation8], %s886_s28  ;;  %214 = sbr.rel (%p211_p3) target bundleno = 261 (0x105), region = 28 }
  0x23   : > { %557 = dma.hbm_to_vmem [thread:$0]  (!%p895_p0), %s201_s4, 256, %s203_s6, %s189_s7, %s798_s18, %s798_s18, %s799_s19  }
  0x24   : > { %s912_s0 = sand.u32 (!%p211_p3), 1, %s780_s13  }
  0x25   : > { %s525_s8 = sshll.u32 (!%p211_p3), %s912_s0, 4  ;;  %s217_s9 = scalar_lea.sflag (!%p211_p3), [#allocation5], %s912_s0 }
  0x26   : > { %s220_s11 = scalar_lea.vmem (!%p211_p3), [#allocation4], %s525_s8 }
  0x27   : > { %759 = dma.done.wait (%p868_p8), %s217_s9, 256  }
  0x28   : > { %761 = vsyncadd (%p868_p8), %s217_s9, 4294967040  ;;  %s227_s28 = scalar_lea.sflag [#allocation8], %s912_s0  ;;  %s230_s29 = scalar_lea.vmem [#allocation7], %s525_s8 }
  0x29   : > { %763 = dma.done.wait (%p868_p8), %s227_s28, 256  }
  0x2a   : > { %765 = vsyncadd (%p868_p8), %s227_s28, 4294967040  ;;  %vm270_vm0 = vcmask 130048   ;;  %v800_v0 = vmov 0.0   ;;  %v275_v1 = vld [vmem:[%s220_s11] sm:$0xff]  ;;  %v276_v2 = vld [vmem:[%s220_s11 + $0x8] sm:$0xff]  ;;  %s533_s24 = sshll.u32 %s788_s15, 3 }
  0x2b   : > { %271 = vst.msk [vmem:[#allocation2] sm:$0xff] %vm270_vm0, %v800_v0  ;;  %v277_v3 = vld [vmem:[%s230_s29] sm:$0xff]  ;;  %v278_v4 = vld [vmem:[%s230_s29 + $0x8] sm:$0xff]  ;;  %s527_s10 = sshll.u32 %s912_s0, 3  ;;  %s355_s21 = scalar_lea.hbm %s992_s2, %s533_s24 }
  0x2c   : > { %272 = vst.msk [vmem:[#allocation2 + $0x8] sm:$0xff] %vm270_vm0, %v800_v0  ;;  %vm279_vm1 = vcmp.gt.f32.partialorder %v277_v3, 0.0  ;;  %v281_v5 = vsub.f32 %v275_v1, %v277_v3  ;;  %vm280_vm2 = vcmp.gt.f32.partialorder %v278_v4, 0.0  ;;  %v282_v6 = vsub.f32 %v276_v2, %v278_v4  ;;  %s256_s23 = scalar_lea.vmem [#allocation9], %s527_s10  ;;  %s359_s22 = sshll.u32 %s355_s21, 4  ;;  %s360_s22 = int_to_ptr.hbm [resolvable:$true] %s359_s22 }
  0x2d   : > { %273 = vst.msk [vmem:[#allocation3] sm:$0xff] %vm270_vm0, %v800_v0  ;;  %v529_v7 = vsel %vm279_vm1, 1.0, %v800_v0  ;;  %v530_v11 = vsel %vm280_vm2, 1.0, %v800_v0  ;;  %s357_s30 = sshll.u32 %s256_s23, 4  ;;  %s369_s7 = scalar_lea.hbm %s993_s3, %s533_s24  ;;  %s358_s30 = int_to_ptr.vmem [resolvable:$true] %s357_s30 }
  0x2e   : > { %274 = vst.msk [vmem:[#allocation3 + $0x8] sm:$0xff] %vm270_vm0, %v800_v0  ;;  %v285_v9 = vmul.f32 %v281_v5, %v281_v5  ;;  %v286_v13 = vmul.f32 %v282_v6, %v282_v6  ;;  %s340_s8 = scalar_lea.sflag [#allocation6], %s912_s0  ;;  %s692_s15 = sshra.s32 %s360_s22, 4  ;;  %s693_s15 = int_to_ptr.hbm [resolvable:$true] %s692_s15 }
  0x2f   : > { %s694_s9 = scalar_lea.hbm %s693_s15, 8  ;;  %s698_s29 = scalar_lea.hbm %s992_s2, 16 }
  0x30   : > { %v287_v16 = vsel %vm279_vm1, %v285_v9, 0.0  ;;  %v288_v18 = vsel %vm280_vm2, %v286_v13, 0.0  ;;  %p695_p4 = scmp.ne.s32.totalorder %s693_s15, %s694_s9  ;;  %p699_p7 = scmp.lt.s32.totalorder %s693_s15, %s992_s2 }
  0x31   : > { %p700_p8 = scmp.lt.s32.totalorder %s698_s29, %s694_s9 }
  0x32   : > { %v283_v8 = vld [vmem:[#allocation2] sm:$0xff]  ;;  %p696_p5 = pnand %p695_p4, %p872_p9 }
  0x33   : > { %v284_v12 = vld [vmem:[#allocation2 + $0x8] sm:$0xff]  ;;  %v289_v19 = vadd.f32 %v287_v16, %v283_v8  ;;  %p701_p10 = por %p700_p8, %p699_p7 }
  0x34   : > { %v294_v10 = vld [vmem:[#allocation3] sm:$0xff]  ;;  %v290_v20 = vadd.f32 %v288_v18, %v284_v12  ;;  %p697_p6 = pneg %p696_p5 }
  0x35   : > { %v295_v14 = vld [vmem:[#allocation3 + $0x8] sm:$0xff]  ;;  %v300_v15 = vadd.f32 %v529_v7, %v294_v10  ;;  %292 = vst.msk [vmem:[#allocation2] sm:$0xff] %vm270_vm0, %v289_v19 }
  0x36   : > { %v301_v17 = vadd.f32 %v530_v11, %v295_v14  ;;  %293 = vst.msk [vmem:[#allocation2 + $0x8] sm:$0xff] %vm270_vm0, %v290_v20  ;;  %p702_p13 = pnand %p701_p10, %p697_p6 }
  0x37   : > { %302 = vst.msk [vmem:[#allocation3] sm:$0xff] %vm270_vm0, %v300_v15 }
  0x38   : > { %303 = vst.msk [vmem:[#allocation3 + $0x8] sm:$0xff] %vm270_vm0, %v301_v17 }
  0x3c   : > { %v307_v21 = vld [vmem:[#allocation2] sm:$0xff] }
  0x3d   : > { %v308_v22 = vld [vmem:[#allocation2 + $0x8] sm:$0xff]  ;;  %v309_v23 = vsel %vm270_vm0, %v307_v21, 0.0 }
  0x3e   : > { %v310_v24 = vsel %vm270_vm0, %v308_v22, 0.0  ;;  %v321_v26 = vld [vmem:[#allocation3] sm:$0xff] }
  0x3f   : > { %v311_v25 = vadd.f32 %v310_v24, %v309_v23  ;;  %v322_v27 = vld [vmem:[#allocation3 + $0x8] sm:$0xff]  ;;  %v323_v28 = vsel %vm270_vm0, %v321_v26, 0.0 }
  0x40   : > { %v324_v29 = vsel %vm270_vm0, %v322_v27, 0.0 }
  0x41   : > { %312 = vadd.xlane.f32.xlu0 %v311_v25  ;;  %v325_v30 = vadd.f32 %v324_v29, %v323_v28 }
  0x49   : > { %326 = vadd.xlane.f32.xlu0 %v325_v30 }
  0xb4   : > { %v313_v31 = vpop.xlane.xlu0 %312 }
  0xb5   : > { %v314_v32 = vrot.slane %v313_v31, 4 }
  0xb7   : > { %v315_v33 = vadd.f32 %v314_v32, %v313_v31 }
  0xb9   : > { %v316_v34 = vrot.slane %v315_v33, 2 }
  0xbb   : > { %v317_v35 = vadd.f32 %v316_v34, %v315_v33 }
  0xbc   : > { %v327_v36 = vpop.xlane.xlu0 %326 }
  0xbd   : > { %v328_v37 = vrot.slane %v327_v36, 4  ;;  %v318_v38 = vrot.slane %v317_v35, 1 }
  0xbf   : > { %v329_v39 = vadd.f32 %v328_v37, %v327_v36  ;;  %v319_v40 = vadd.f32 %v318_v38, %v317_v35 }
  0xc1   : > { %v330_v41 = vrot.slane %v329_v39, 2  ;;  %539 = vpush %v319_v40 }
  0xc3   : > { %v331_v42 = vadd.f32 %v330_v41, %v329_v39 }
  0xc5   : > { %v332_v43 = vrot.slane %v331_v42, 1 }
  0xc7   : > { %v333_v44 = vadd.f32 %v332_v43, %v331_v42 }
  0xc9   : > { %541 = vpush %v333_v44 }
  0xf2   : > { %s540_s4 = spop %539 }
  0xf3   : > { %v335_v45 = vstv %s540_s4 }
  0xf4   : > { %336 = vst [vmem:[%s256_s23] sm:$0xff] %v335_v45 }
  0xf5   : > { %705 = shalt.err (!%p702_p13)
}
  0xf6   : > { %547 = dma.vmem_to_hbm [thread:$0]  (%p872_p9), %s358_s30, 128, %s360_s22, %s340_s8  }
  0xf7   : > { %s263_s24 = scalar_lea.vmem [#allocation10], %s527_s10  ;;  %s373_s23 = sshll.u32 %s369_s7, 4  ;;  %s374_s23 = int_to_ptr.hbm [resolvable:$true] %s373_s23 }
  0xf8   : > { %s371_s21 = sshll.u32 %s263_s24, 4  ;;  %s345_s5 = scalar_lea.sflag [#allocation11], %s912_s0  ;;  %s372_s21 = int_to_ptr.vmem [resolvable:$true] %s371_s21 }
  0xf9   : > { %s720_s6 = sshra.s32 %s374_s23, 4  ;;  %s726_s30 = scalar_lea.hbm %s993_s3, 16  ;;  %s721_s6 = int_to_ptr.hbm [resolvable:$true] %s720_s6 }
  0xfa   : > { %s542_s4 = spop %541  ;;  %s722_s15 = scalar_lea.hbm %s721_s6, 8 }
  0xfb   : > { %v337_v46 = vstv %s542_s4  ;;  %p723_p0 = scmp.ne.s32.totalorder %s721_s6, %s722_s15  ;;  %p727_p3 = scmp.lt.s32.totalorder %s721_s6, %s993_s3 }
  0xfc   : > { %338 = vst [vmem:[%s263_s24] sm:$0xff] %v337_v46  ;;  %p728_p4 = scmp.lt.s32.totalorder %s726_s30, %s722_s15 }
  0xfd   : > { %p724_p1 = pnand %p723_p0, %p872_p9 }
  0xfe   : > { %p729_p5 = por %p728_p4, %p727_p3 }
  0xff   : > { %p725_p2 = pneg %p724_p1 }
 0x101   : > { %p730_p6 = pnand %p729_p5, %p725_p2 }
 0x103   : > { %733 = shalt.err (!%p730_p6)
}
 0x104   : > { %548 = dma.vmem_to_hbm [thread:$0]  (%p872_p9), %s372_s21, 128, %s374_s23, %s345_s5  }
 0x105 PF: > { %s385_s0 = sand.u32 1, %s776_s12   ;;  %p559_p7 = pnand %p517_p12, %p879_p11 }
 0x106   : > { %s386_s7 = scalar_lea.sflag [#allocation6], %s385_s0 }
 0x107   : > { %p560_p8 = pneg %p559_p7 }
 0x109   : > { %767 = dma.done.wait (%p560_p8), %s386_s7, 128  }
 0x10a   : > { %769 = vsyncadd (%p560_p8), %s386_s7, 4294967168  ;;  %s396_s8 = scalar_lea.sflag [#allocation11], %s385_s0 }
 0x10b   : > { %771 = dma.done.wait (%p560_p8), %s396_s8, 128  }
 0x10c   : > { %773 = vsyncadd (%p560_p8), %s396_s8, 4294967168  ;;  %s26_s17 = sadd.s32 1, %s796_s17   ;;  %s1001_s12 = smov %s780_s13 }
 0x10d   : > { %p23_p10 = scmp.ge.s32.totalorder %s26_s17, 4   ;;  %s1002_s13 = smov %s784_s14 }
 0x10e   : > { %s1003_s14 = smov %s877_s26  ;;  %s1004_s15 = smov %s792_s16 }
 0x10f   : > { %s1005_s16 = smov %s1007_s20  ;;  %25 = sbr.rel (!%p23_p10) target bundleno = 12 (0xc), region = 111 }
 0x114   :  { %402 = vsyncpa [#allocation5], 1 }
 0x115   :  { %404 = vsyncpa [#allocation5 + $0x1], 1 }
 0x116   :  { %405 = vsyncpa [#allocation8], 1 }
 0x117   :  { %407 = vsyncpa [#allocation8 + $0x1], 1 }
 0x118   :  { %408 = vsyncpa [#allocation6], 1 }
 0x119   :  { %410 = vsyncpa [#allocation6 + $0x1], 1 }
 0x11a   :  { %411 = vsyncpa [#allocation11], 1 }
 0x11b   :  { %413 = vsyncpa [#allocation11 + $0x1], 1 }

</bundles_post_ra>
